<compile_context>
chip_gen: v5e
topology: v5e:2x2
jax: 0.10.0
libtpu: 0.0.40
codegen_flags: <defaults>
</compile_context>

<pallas_src>
import math
from functools import partial

import jax
import jax.numpy as jnp
from jax import lax
from jax.experimental import pallas as pl
from jax.experimental.pallas import tpu as pltpu

# ---- small config consistent with the module ----
BATCH = 2
SEQ = 8          # T
EMBED = 32       # C
NB_HEAD = 4
HEAD = EMBED // NB_HEAD
EPS = 1e-5


def _layernorm(v, w, b):
    mu = jnp.mean(v, axis=-1, keepdims=True)
    var = jnp.mean(jnp.square(v - mu), axis=-1, keepdims=True)
    return (v - mu) * lax.rsqrt(var + EPS) * w + b


def _erf(x):
    # Abramowitz & Stegun 7.1.26 (|abs err| < 1.5e-7); only exp / mul / add / div / select,
    # all of which have guaranteed Mosaic lowerings.
    a1, a2, a3, a4, a5 = 0.254829592, -0.284496736, 1.421413741, -1.453152027, 1.061405429
    p = 0.3275911
    ax = jnp.abs(x)
    t = 1.0 / (1.0 + p * ax)
    poly = ((((a5 * t + a4) * t + a3) * t + a2) * t + a1) * t
    e = 1.0 - poly * jnp.exp(-ax * ax)
    return jnp.where(x >= 0.0, e, -e)


def _gelu_exact(x):
    # Matches nn.GELU() (exact erf form) to ~1e-7.
    return 0.5 * x * (1.0 + _erf(x * (1.0 / math.sqrt(2.0))))


def _block_kernel(x_ref, wqkv_ref, wproj_ref, fcw_ref, fc2w_ref, p_ref, o_ref,
                  *, nb_head):
    x = x_ref[0].astype(jnp.float32)                       # (T, C) — one batch element
    t, c = x.shape
    head = c // nb_head
    scale = 1.0 / math.sqrt(head)

    # Packed small params: one (8, 128) slab, rows zero-padded on the lane axis.
    ln1_w = p_ref[0:1, :c]
    ln1_b = p_ref[1:2, :c]
    ln2_w = p_ref[2:3, :c]
    ln2_b = p_ref[3:4, :c]
    attn_b = p_ref[4:5, :3 * c]
    proj_b = p_ref[5:6, :c]
    fc_b = p_ref[6:7, :4 * c]
    fc2_b = p_ref[7:8, :c]

    # ---- attention: ln_1 -> single qkv matmul -> per-head causal SDPA -> single c_proj ----
    h = _layernorm(x, ln1_w, ln1_b)
    qkv = jnp.dot(h, wqkv_ref[...],
                  preferred_element_type=jnp.float32) + attn_b          # (T, 3C)

    row = lax.broadcasted_iota(jnp.int32, (t, t), 0)
    col = lax.broadcasted_iota(jnp.int32, (t, t), 1)
    causal = row >= col
    neg = jnp.finfo(jnp.float32).min                                    # dtype-aware fill

    y_heads = []
    for hd in range(nb_head):                                           # static unroll (=4)
        lo = hd * head
        qh = qkv[:, lo:lo + head]                                       # lazy lane slices
        kh = qkv[:, c + lo:c + lo + head]
        vh = qkv[:, 2 * c + lo:2 * c + lo + head]
        s = lax.dot_general(qh, kh, (((1,), (1,)), ((), ())),
                            preferred_element_type=jnp.float32) * scale  # (T, T)
        s = jnp.where(causal, s, neg)
        s = s - jnp.max(s, axis=-1, keepdims=True)
        p = jnp.exp(s)
        p = p * pl.reciprocal(jnp.sum(p, axis=-1, keepdims=True), approx=False)
        y_heads.append(jnp.dot(p, vh, preferred_element_type=jnp.float32))
    y = jnp.concatenate(y_heads, axis=-1)                               # (T, C), lane-packed

    x = x + jnp.dot(y, wproj_ref[...], preferred_element_type=jnp.float32) + proj_b

    # ---- MLP: ln_2 -> c_fc -> exact GELU -> c_proj ----
    h2 = _layernorm(x, ln2_w, ln2_b)
    ff = jnp.dot(h2, fcw_ref[...], preferred_element_type=jnp.float32) + fc_b   # (T, 4C)
    ff = _gelu_exact(ff)
    x = x + jnp.dot(ff, fc2w_ref[...], preferred_element_type=jnp.float32) + fc2_b

    # TODO(synk): at real sizes present this store lane-dense (last dim multiple of 128);
    # at C=32 the masked vst is negligible.
    o_ref[0] = x.astype(o_ref.dtype)


def _pack_small(C, ln1_w, ln1_b, ln2_w, ln2_b, attn_b, proj_b, fc_b, fc2_b):
    """Pack the 8 small LN/bias vectors into one (8, >=128) f32 slab (zero padded)."""
    lane = max(128, ((4 * C + 127) // 128) * 128)

    def row(v):
        v = v.reshape(-1).astype(jnp.float32)
        return jnp.pad(v, (0, lane - v.shape[0]))

    return jnp.stack([row(ln1_w), row(ln1_b), row(ln2_w), row(ln2_b),
                      row(attn_b), row(proj_b), row(fc_b), row(fc2_b)])


@jax.jit
def gpt2_block(x, params):
    (ln1_w, ln1_b, attn_w, attn_b, proj_w, proj_b,
     ln2_w, ln2_b, fc_w, fc_b, fc2_w, fc2_b) = params
    B, T, C = x.shape

    small = _pack_small(C, ln1_w, ln1_b, ln2_w, ln2_b, attn_b, proj_b, fc_b, fc2_b)
    lane = small.shape[-1]

    kernel = partial(_block_kernel, nb_head=NB_HEAD)
    grid_spec = pltpu.PrefetchScalarGridSpec(
        num_scalar_prefetch=0,
        grid=(B,),                                          # batch axis -> megacore on v7x
        in_specs=[
            pl.BlockSpec((1, T, C), lambda b: (b, 0, 0)),   # x: one batch row per step
            pl.BlockSpec((C, 3 * C), lambda b: (0, 0)),     # attn_w (constant index -> resident)
            pl.BlockSpec((C, C), lambda b: (0, 0)),         # proj_w
            pl.BlockSpec((C, 4 * C), lambda b: (0, 0)),     # fc_w
            pl.BlockSpec((4 * C, C), lambda b: (0, 0)),     # fc2_w
            pl.BlockSpec((8, lane), lambda b: (0, 0)),      # packed LN / bias slab
        ],
        out_specs=pl.BlockSpec((1, T, C), lambda b: (b, 0, 0)),
    )
    return pl.pallas_call(
        kernel,
        out_shape=jax.ShapeDtypeStruct((B, T, C), x.dtype),
        grid_spec=grid_spec,
        compiler_params=pltpu.CompilerParams(
            dimension_semantics=("parallel",),
            vmem_limit_bytes=32 * 1024 * 1024),
    )(x, attn_w, proj_w, fc_w, fc2_w, small)


def init_params(key):
    ks = jax.random.split(key, 10)
    std = 0.02
    # Non-trivial LN / bias values so the packed-slab plumbing is actually exercised.
    ln1_w = 1.0 + 0.1 * jax.random.normal(ks[0], (EMBED,), jnp.float32)
    ln1_b = 0.1 * jax.random.normal(ks[1], (EMBED,), jnp.float32)
    ln2_w = 1.0 + 0.1 * jax.random.normal(ks[2], (EMBED,), jnp.float32)
    ln2_b = 0.1 * jax.random.normal(ks[3], (EMBED,), jnp.float32)
    attn_w = jax.random.normal(ks[4], (EMBED, 3 * EMBED), jnp.float32) * std
    attn_b = jax.random.normal(ks[5], (3 * EMBED,), jnp.float32) * std
    proj_w = jax.random.normal(ks[6], (EMBED, EMBED), jnp.float32) * std
    proj_b = jax.random.normal(ks[7], (EMBED,), jnp.float32) * std
    fc_w = jax.random.normal(ks[8], (EMBED, 4 * EMBED), jnp.float32) * std
    fc_b = jax.random.normal(ks[9], (4 * EMBED,), jnp.float32) * std
    fc2_w = jax.random.normal(ks[4], (4 * EMBED, EMBED), jnp.float32) * std
    fc2_b = jax.random.normal(ks[5], (EMBED,), jnp.float32) * std
    return (ln1_w, ln1_b, attn_w, attn_b, proj_w, proj_b,
            ln2_w, ln2_b, fc_w, fc_b, fc2_w, fc2_b)


def reference_block(x, params):
    """Pure-JAX reference with the PyTorch module's semantics."""
    (ln1_w, ln1_b, attn_w, attn_b, proj_w, proj_b,
     ln2_w, ln2_b, fc_w, fc_b, fc2_w, fc2_b) = params
    B, T, C = x.shape

    def ln(v, w, b):
        mu = jnp.mean(v, -1, keepdims=True)
        var = jnp.mean((v - mu) ** 2, -1, keepdims=True)
        return (v - mu) / jnp.sqrt(var + EPS) * w + b

    h = ln(x, ln1_w, ln1_b)
    qkv = h @ attn_w + attn_b
    q, k, v = jnp.split(qkv, 3, axis=-1)
    q = q.reshape(B, T, NB_HEAD, HEAD).transpose(0, 2, 1, 3)
    k = k.reshape(B, T, NB_HEAD, HEAD).transpose(0, 2, 1, 3)
    v = v.reshape(B, T, NB_HEAD, HEAD).transpose(0, 2, 1, 3)
    s = jnp.einsum("bhqd,bhkd->bhqk", q, k) / math.sqrt(HEAD)
    mask = jnp.tril(jnp.ones((T, T), bool))
    s = jnp.where(mask, s, -jnp.inf)
    p = jax.nn.softmax(s, axis=-1)
    y = jnp.einsum("bhqk,bhkd->bhqd", p, v).transpose(0, 2, 1, 3).reshape(B, T, C)
    x = x + (y @ proj_w + proj_b)

    h2 = ln(x, ln2_w, ln2_b)
    ff = jax.nn.gelu(h2 @ fc_w + fc_b, approximate=False)
    x = x + (ff @ fc2_w + fc2_b)
    return x


if __name__ == "__main__":
    key = jax.random.PRNGKey(0)
    kx, kp = jax.random.split(key)
    x = jax.random.normal(kx, (BATCH, SEQ, EMBED), jnp.float32)
    params = init_params(kp)

    out = jax.block_until_ready(gpt2_block(x, params))
    ref = reference_block(x, params)

    assert out.shape == (BATCH, SEQ, EMBED)
    err = float(jnp.max(jnp.abs(out - ref)))
    # Tolerance covers the difference between the in-kernel MXU f32 matmul path and the
    # host reference's default XLA matmul precision (softmax / GELU / LN are exact f32).
    assert jnp.allclose(out, ref, atol=2e-3, rtol=2e-3), f"max abs err {err}"
    print("KERNEL_OK")
</pallas_src>

<mosaic_0001>
module attributes {stable_mosaic.version = 11 : i64} {
  func.func @_block_kernel(%arg0: i32, %arg1: memref<1x8x32xf32, #tpu.memory_space<vmem>>, %arg2: memref<32x96xf32, #tpu.memory_space<vmem>>, %arg3: memref<32x32xf32, #tpu.memory_space<vmem>>, %arg4: memref<32x128xf32, #tpu.memory_space<vmem>>, %arg5: memref<128x32xf32, #tpu.memory_space<vmem>>, %arg6: memref<8x128xf32, #tpu.memory_space<vmem>>, %arg7: memref<1x8x32xf32, #tpu.memory_space<vmem>>) attributes {dimension_semantics = [#tpu.dimension_semantics<parallel>], iteration_bounds = array<i64: 2>, scalar_prefetch = 0 : i64, scratch_operands = 0 : i64, tpu.core_type = #tpu.core_type<tc>, window_params = [{transform_indices = @transform_0, window_bounds = array<i64: 1, 8, 32>}, {pipeline_mode = #tpu.pipeline_mode<synchronous>, transform_indices = @transform_1, window_bounds = array<i64: 32, 96>}, {pipeline_mode = #tpu.pipeline_mode<synchronous>, transform_indices = @transform_2, window_bounds = array<i64: 32, 32>}, {pipeline_mode = #tpu.pipeline_mode<synchronous>, transform_indices = @transform_3, window_bounds = array<i64: 32, 128>}, {pipeline_mode = #tpu.pipeline_mode<synchronous>, transform_indices = @transform_4, window_bounds = array<i64: 128, 32>}, {pipeline_mode = #tpu.pipeline_mode<synchronous>, transform_indices = @transform_5, window_bounds = array<i64: 8, 128>}, {transform_indices = @transform_6, window_bounds = array<i64: 1, 8, 32>}]} {
    %c0 = arith.constant 0 : index
    %c0_0 = arith.constant 0 : index
    %c0_1 = arith.constant 0 : index
    %0 = vector.load %arg1[%c0, %c0_0, %c0_1] : memref<1x8x32xf32, #tpu.memory_space<vmem>>, vector<1x8x32xf32>
    %1 = vector.shape_cast %0 : vector<1x8x32xf32> to vector<8x32xf32>
    %c0_2 = arith.constant 0 : index
    %c0_3 = arith.constant 0 : index
    %2 = vector.load %arg6[%c0_2, %c0_3] : memref<8x128xf32, #tpu.memory_space<vmem>>, vector<1x32xf32>
    %c1 = arith.constant 1 : index
    %c0_4 = arith.constant 0 : index
    %3 = vector.load %arg6[%c1, %c0_4] : memref<8x128xf32, #tpu.memory_space<vmem>>, vector<1x32xf32>
    %c2 = arith.constant 2 : index
    %c0_5 = arith.constant 0 : index
    %4 = vector.load %arg6[%c2, %c0_5] : memref<8x128xf32, #tpu.memory_space<vmem>>, vector<1x32xf32>
    %c3 = arith.constant 3 : index
    %c0_6 = arith.constant 0 : index
    %5 = vector.load %arg6[%c3, %c0_6] : memref<8x128xf32, #tpu.memory_space<vmem>>, vector<1x32xf32>
    %c4 = arith.constant 4 : index
    %c0_7 = arith.constant 0 : index
    %6 = vector.load %arg6[%c4, %c0_7] : memref<8x128xf32, #tpu.memory_space<vmem>>, vector<1x96xf32>
    %c5 = arith.constant 5 : index
    %c0_8 = arith.constant 0 : index
    %7 = vector.load %arg6[%c5, %c0_8] : memref<8x128xf32, #tpu.memory_space<vmem>>, vector<1x32xf32>
    %c6 = arith.constant 6 : index
    %c0_9 = arith.constant 0 : index
    %8 = vector.load %arg6[%c6, %c0_9] : memref<8x128xf32, #tpu.memory_space<vmem>>, vector<1x128xf32>
    %c7 = arith.constant 7 : index
    %c0_10 = arith.constant 0 : index
    %9 = vector.load %arg6[%c7, %c0_10] : memref<8x128xf32, #tpu.memory_space<vmem>>, vector<1x32xf32>
    %cst = arith.constant dense<0.000000e+00> : vector<8xf32>
    %10 = vector.multi_reduction <add>, %1, %cst [1] : vector<8x32xf32> to vector<8xf32>
    %11 = vector.shape_cast %10 : vector<8xf32> to vector<8x1xf32>
    %cst_11 = arith.constant 3.200000e+01 : f32
    %12 = vector.broadcast %cst_11 : f32 to vector<8x1xf32>
    %13 = arith.divf %11, %12 : vector<8x1xf32>
    %14 = vector.broadcast %13 : vector<8x1xf32> to vector<8x32xf32>
    %15 = arith.subf %1, %14 : vector<8x32xf32>
    %16 = arith.mulf %15, %15 : vector<8x32xf32>
    %cst_12 = arith.constant dense<0.000000e+00> : vector<8xf32>
    %17 = vector.multi_reduction <add>, %16, %cst_12 [1] : vector<8x32xf32> to vector<8xf32>
    %18 = vector.shape_cast %17 : vector<8xf32> to vector<8x1xf32>
    %cst_13 = arith.constant 3.200000e+01 : f32
    %19 = vector.broadcast %cst_13 : f32 to vector<8x1xf32>
    %20 = arith.divf %18, %19 : vector<8x1xf32>
    %21 = vector.broadcast %13 : vector<8x1xf32> to vector<8x32xf32>
    %22 = arith.subf %1, %21 : vector<8x32xf32>
    %cst_14 = arith.constant 9.99999974E-6 : f32
    %23 = vector.broadcast %cst_14 : f32 to vector<8x1xf32>
    %24 = arith.addf %20, %23 : vector<8x1xf32>
    %25 = math.rsqrt %24 : vector<8x1xf32>
    %26 = vector.broadcast %25 : vector<8x1xf32> to vector<8x32xf32>
    %27 = arith.mulf %22, %26 : vector<8x32xf32>
    %28 = vector.broadcast %2 : vector<1x32xf32> to vector<8x32xf32>
    %29 = arith.mulf %27, %28 : vector<8x32xf32>
    %30 = vector.broadcast %3 : vector<1x32xf32> to vector<8x32xf32>
    %31 = arith.addf %29, %30 : vector<8x32xf32>
    %c0_15 = arith.constant 0 : index
    %c0_16 = arith.constant 0 : index
    %32 = vector.load %arg2[%c0_15, %c0_16] : memref<32x96xf32, #tpu.memory_space<vmem>>, vector<32x96xf32>
    %cst_17 = arith.constant dense<0.000000e+00> : vector<8x96xf32>
    %33 = tpu.matmul %31, %32, %cst_17 {dimension_numbers = #tpu.dot_dimension_numbers<[1], [0], [0], [1], [0, 0, 1, 1], [], []>} : vector<8x32xf32>, vector<32x96xf32>, vector<8x96xf32> -> vector<8x96xf32>
    %34 = vector.broadcast %6 : vector<1x96xf32> to vector<8x96xf32>
    %35 = arith.addf %33, %34 : vector<8x96xf32>
    %36 = tpu.iota {dimensions = array<i32: 0>} : vector<8x8xi32>
    %37 = tpu.iota {dimensions = array<i32: 1>} : vector<8x8xi32>
    %38 = arith.cmpi sge, %36, %37 : vector<8x8xi32>
    %39 = vector.extract_strided_slice %35 {offsets = [0, 0], sizes = [8, 8], strides = [1, 1]} : vector<8x96xf32> to vector<8x8xf32>
    %40 = vector.extract_strided_slice %35 {offsets = [0, 32], sizes = [8, 8], strides = [1, 1]} : vector<8x96xf32> to vector<8x8xf32>
    %41 = vector.extract_strided_slice %35 {offsets = [0, 64], sizes = [8, 8], strides = [1, 1]} : vector<8x96xf32> to vector<8x8xf32>
    %cst_18 = arith.constant dense<0.000000e+00> : vector<8x8xf32>
    %42 = tpu.matmul %39, %40, %cst_18 {dimension_numbers = #tpu.dot_dimension_numbers<[1], [1], [0], [0], [0, 0, 1, 0], [], []>} : vector<8x8xf32>, vector<8x8xf32>, vector<8x8xf32> -> vector<8x8xf32>
    %cst_19 = arith.constant 0.353553385 : f32
    %43 = vector.broadcast %cst_19 : f32 to vector<8x8xf32>
    %44 = arith.mulf %42, %43 : vector<8x8xf32>
    %cst_20 = arith.constant -3.40282347E+38 : f32
    %45 = vector.broadcast %cst_20 : f32 to vector<8x8xf32>
    %46 = arith.select %38, %44, %45 : vector<8x8xi1>, vector<8x8xf32>
    %cst_21 = arith.constant dense<0xFF800000> : vector<8xf32>
    %47 = vector.multi_reduction <maximumf>, %46, %cst_21 [1] : vector<8x8xf32> to vector<8xf32>
    %48 = vector.shape_cast %47 : vector<8xf32> to vector<8x1xf32>
    %49 = vector.broadcast %48 : vector<8x1xf32> to vector<8x8xf32>
    %50 = arith.subf %46, %49 : vector<8x8xf32>
    %51 = math.exp %50 : vector<8x8xf32>
    %cst_22 = arith.constant dense<0.000000e+00> : vector<8xf32>
    %52 = vector.multi_reduction <add>, %51, %cst_22 [1] : vector<8x8xf32> to vector<8xf32>
    %53 = vector.shape_cast %52 : vector<8xf32> to vector<8x1xf32>
    %54 = tpu.reciprocal %53 : vector<8x1xf32> -> vector<8x1xf32>
    %55 = vector.broadcast %54 : vector<8x1xf32> to vector<8x8xf32>
    %56 = arith.mulf %51, %55 : vector<8x8xf32>
    %cst_23 = arith.constant dense<0.000000e+00> : vector<8x8xf32>
    %57 = tpu.matmul %56, %41, %cst_23 {dimension_numbers = #tpu.dot_dimension_numbers<[1], [0], [0], [1], [0, 0, 1, 1], [], []>} : vector<8x8xf32>, vector<8x8xf32>, vector<8x8xf32> -> vector<8x8xf32>
    %58 = vector.extract_strided_slice %35 {offsets = [0, 8], sizes = [8, 8], strides = [1, 1]} : vector<8x96xf32> to vector<8x8xf32>
    %59 = vector.extract_strided_slice %35 {offsets = [0, 40], sizes = [8, 8], strides = [1, 1]} : vector<8x96xf32> to vector<8x8xf32>
    %60 = vector.extract_strided_slice %35 {offsets = [0, 72], sizes = [8, 8], strides = [1, 1]} : vector<8x96xf32> to vector<8x8xf32>
    %cst_24 = arith.constant dense<0.000000e+00> : vector<8x8xf32>
    %61 = tpu.matmul %58, %59, %cst_24 {dimension_numbers = #tpu.dot_dimension_numbers<[1], [1], [0], [0], [0, 0, 1, 0], [], []>} : vector<8x8xf32>, vector<8x8xf32>, vector<8x8xf32> -> vector<8x8xf32>
    %cst_25 = arith.constant 0.353553385 : f32
    %62 = vector.broadcast %cst_25 : f32 to vector<8x8xf32>
    %63 = arith.mulf %61, %62 : vector<8x8xf32>
    %cst_26 = arith.constant -3.40282347E+38 : f32
    %64 = vector.broadcast %cst_26 : f32 to vector<8x8xf32>
    %65 = arith.select %38, %63, %64 : vector<8x8xi1>, vector<8x8xf32>
    %cst_27 = arith.constant dense<0xFF800000> : vector<8xf32>
    %66 = vector.multi_reduction <maximumf>, %65, %cst_27 [1] : vector<8x8xf32> to vector<8xf32>
    %67 = vector.shape_cast %66 : vector<8xf32> to vector<8x1xf32>
    %68 = vector.broadcast %67 : vector<8x1xf32> to vector<8x8xf32>
    %69 = arith.subf %65, %68 : vector<8x8xf32>
    %70 = math.exp %69 : vector<8x8xf32>
    %cst_28 = arith.constant dense<0.000000e+00> : vector<8xf32>
    %71 = vector.multi_reduction <add>, %70, %cst_28 [1] : vector<8x8xf32> to vector<8xf32>
    %72 = vector.shape_cast %71 : vector<8xf32> to vector<8x1xf32>
    %73 = tpu.reciprocal %72 : vector<8x1xf32> -> vector<8x1xf32>
    %74 = vector.broadcast %73 : vector<8x1xf32> to vector<8x8xf32>
    %75 = arith.mulf %70, %74 : vector<8x8xf32>
    %cst_29 = arith.constant dense<0.000000e+00> : vector<8x8xf32>
    %76 = tpu.matmul %75, %60, %cst_29 {dimension_numbers = #tpu.dot_dimension_numbers<[1], [0], [0], [1], [0, 0, 1, 1], [], []>} : vector<8x8xf32>, vector<8x8xf32>, vector<8x8xf32> -> vector<8x8xf32>
    %77 = vector.extract_strided_slice %35 {offsets = [0, 16], sizes = [8, 8], strides = [1, 1]} : vector<8x96xf32> to vector<8x8xf32>
    %78 = vector.extract_strided_slice %35 {offsets = [0, 48], sizes = [8, 8], strides = [1, 1]} : vector<8x96xf32> to vector<8x8xf32>
    %79 = vector.extract_strided_slice %35 {offsets = [0, 80], sizes = [8, 8], strides = [1, 1]} : vector<8x96xf32> to vector<8x8xf32>
    %cst_30 = arith.constant dense<0.000000e+00> : vector<8x8xf32>
    %80 = tpu.matmul %77, %78, %cst_30 {dimension_numbers = #tpu.dot_dimension_numbers<[1], [1], [0], [0], [0, 0, 1, 0], [], []>} : vector<8x8xf32>, vector<8x8xf32>, vector<8x8xf32> -> vector<8x8xf32>
    %cst_31 = arith.constant 0.353553385 : f32
    %81 = vector.broadcast %cst_31 : f32 to vector<8x8xf32>
    %82 = arith.mulf %80, %81 : vector<8x8xf32>
    %cst_32 = arith.constant -3.40282347E+38 : f32
    %83 = vector.broadcast %cst_32 : f32 to vector<8x8xf32>
    %84 = arith.select %38, %82, %83 : vector<8x8xi1>, vector<8x8xf32>
    %cst_33 = arith.constant dense<0xFF800000> : vector<8xf32>
    %85 = vector.multi_reduction <maximumf>, %84, %cst_33 [1] : vector<8x8xf32> to vector<8xf32>
    %86 = vector.shape_cast %85 : vector<8xf32> to vector<8x1xf32>
    %87 = vector.broadcast %86 : vector<8x1xf32> to vector<8x8xf32>
    %88 = arith.subf %84, %87 : vector<8x8xf32>
    %89 = math.exp %88 : vector<8x8xf32>
    %cst_34 = arith.constant dense<0.000000e+00> : vector<8xf32>
    %90 = vector.multi_reduction <add>, %89, %cst_34 [1] : vector<8x8xf32> to vector<8xf32>
    %91 = vector.shape_cast %90 : vector<8xf32> to vector<8x1xf32>
    %92 = tpu.reciprocal %91 : vector<8x1xf32> -> vector<8x1xf32>
    %93 = vector.broadcast %92 : vector<8x1xf32> to vector<8x8xf32>
    %94 = arith.mulf %89, %93 : vector<8x8xf32>
    %cst_35 = arith.constant dense<0.000000e+00> : vector<8x8xf32>
    %95 = tpu.matmul %94, %79, %cst_35 {dimension_numbers = #tpu.dot_dimension_numbers<[1], [0], [0], [1], [0, 0, 1, 1], [], []>} : vector<8x8xf32>, vector<8x8xf32>, vector<8x8xf32> -> vector<8x8xf32>
    %96 = vector.extract_strided_slice %35 {offsets = [0, 24], sizes = [8, 8], strides = [1, 1]} : vector<8x96xf32> to vector<8x8xf32>
    %97 = vector.extract_strided_slice %35 {offsets = [0, 56], sizes = [8, 8], strides = [1, 1]} : vector<8x96xf32> to vector<8x8xf32>
    %98 = vector.extract_strided_slice %35 {offsets = [0, 88], sizes = [8, 8], strides = [1, 1]} : vector<8x96xf32> to vector<8x8xf32>
    %cst_36 = arith.constant dense<0.000000e+00> : vector<8x8xf32>
    %99 = tpu.matmul %96, %97, %cst_36 {dimension_numbers = #tpu.dot_dimension_numbers<[1], [1], [0], [0], [0, 0, 1, 0], [], []>} : vector<8x8xf32>, vector<8x8xf32>, vector<8x8xf32> -> vector<8x8xf32>
    %cst_37 = arith.constant 0.353553385 : f32
    %100 = vector.broadcast %cst_37 : f32 to vector<8x8xf32>
    %101 = arith.mulf %99, %100 : vector<8x8xf32>
    %cst_38 = arith.constant -3.40282347E+38 : f32
    %102 = vector.broadcast %cst_38 : f32 to vector<8x8xf32>
    %103 = arith.select %38, %101, %102 : vector<8x8xi1>, vector<8x8xf32>
    %cst_39 = arith.constant dense<0xFF800000> : vector<8xf32>
    %104 = vector.multi_reduction <maximumf>, %103, %cst_39 [1] : vector<8x8xf32> to vector<8xf32>
    %105 = vector.shape_cast %104 : vector<8xf32> to vector<8x1xf32>
    %106 = vector.broadcast %105 : vector<8x1xf32> to vector<8x8xf32>
    %107 = arith.subf %103, %106 : vector<8x8xf32>
    %108 = math.exp %107 : vector<8x8xf32>
    %cst_40 = arith.constant dense<0.000000e+00> : vector<8xf32>
    %109 = vector.multi_reduction <add>, %108, %cst_40 [1] : vector<8x8xf32> to vector<8xf32>
    %110 = vector.shape_cast %109 : vector<8xf32> to vector<8x1xf32>
    %111 = tpu.reciprocal %110 : vector<8x1xf32> -> vector<8x1xf32>
    %112 = vector.broadcast %111 : vector<8x1xf32> to vector<8x8xf32>
    %113 = arith.mulf %108, %112 : vector<8x8xf32>
    %cst_41 = arith.constant dense<0.000000e+00> : vector<8x8xf32>
    %114 = tpu.matmul %113, %98, %cst_41 {dimension_numbers = #tpu.dot_dimension_numbers<[1], [0], [0], [1], [0, 0, 1, 1], [], []>} : vector<8x8xf32>, vector<8x8xf32>, vector<8x8xf32> -> vector<8x8xf32>
    %115 = tpu.concatenate %57, %76, %95, %114 in 1 : vector<8x8xf32>, vector<8x8xf32>, vector<8x8xf32>, vector<8x8xf32> -> vector<8x32xf32>
    %c0_42 = arith.constant 0 : index
    %c0_43 = arith.constant 0 : index
    %116 = vector.load %arg3[%c0_42, %c0_43] : memref<32x32xf32, #tpu.memory_space<vmem>>, vector<32x32xf32>
    %cst_44 = arith.constant dense<0.000000e+00> : vector<8x32xf32>
    %117 = tpu.matmul %115, %116, %cst_44 {dimension_numbers = #tpu.dot_dimension_numbers<[1], [0], [0], [1], [0, 0, 1, 1], [], []>} : vector<8x32xf32>, vector<32x32xf32>, vector<8x32xf32> -> vector<8x32xf32>
    %118 = arith.addf %1, %117 : vector<8x32xf32>
    %119 = vector.broadcast %7 : vector<1x32xf32> to vector<8x32xf32>
    %120 = arith.addf %118, %119 : vector<8x32xf32>
    %cst_45 = arith.constant dense<0.000000e+00> : vector<8xf32>
    %121 = vector.multi_reduction <add>, %120, %cst_45 [1] : vector<8x32xf32> to vector<8xf32>
    %122 = vector.shape_cast %121 : vector<8xf32> to vector<8x1xf32>
    %cst_46 = arith.constant 3.200000e+01 : f32
    %123 = vector.broadcast %cst_46 : f32 to vector<8x1xf32>
    %124 = arith.divf %122, %123 : vector<8x1xf32>
    %125 = vector.broadcast %124 : vector<8x1xf32> to vector<8x32xf32>
    %126 = arith.subf %120, %125 : vector<8x32xf32>
    %127 = arith.mulf %126, %126 : vector<8x32xf32>
    %cst_47 = arith.constant dense<0.000000e+00> : vector<8xf32>
    %128 = vector.multi_reduction <add>, %127, %cst_47 [1] : vector<8x32xf32> to vector<8xf32>
    %129 = vector.shape_cast %128 : vector<8xf32> to vector<8x1xf32>
    %cst_48 = arith.constant 3.200000e+01 : f32
    %130 = vector.broadcast %cst_48 : f32 to vector<8x1xf32>
    %131 = arith.divf %129, %130 : vector<8x1xf32>
    %132 = vector.broadcast %124 : vector<8x1xf32> to vector<8x32xf32>
    %133 = arith.subf %120, %132 : vector<8x32xf32>
    %cst_49 = arith.constant 9.99999974E-6 : f32
    %134 = vector.broadcast %cst_49 : f32 to vector<8x1xf32>
    %135 = arith.addf %131, %134 : vector<8x1xf32>
    %136 = math.rsqrt %135 : vector<8x1xf32>
    %137 = vector.broadcast %136 : vector<8x1xf32> to vector<8x32xf32>
    %138 = arith.mulf %133, %137 : vector<8x32xf32>
    %139 = vector.broadcast %4 : vector<1x32xf32> to vector<8x32xf32>
    %140 = arith.mulf %138, %139 : vector<8x32xf32>
    %141 = vector.broadcast %5 : vector<1x32xf32> to vector<8x32xf32>
    %142 = arith.addf %140, %141 : vector<8x32xf32>
    %c0_50 = arith.constant 0 : index
    %c0_51 = arith.constant 0 : index
    %143 = vector.load %arg4[%c0_50, %c0_51] : memref<32x128xf32, #tpu.memory_space<vmem>>, vector<32x128xf32>
    %cst_52 = arith.constant dense<0.000000e+00> : vector<8x128xf32>
    %144 = tpu.matmul %142, %143, %cst_52 {dimension_numbers = #tpu.dot_dimension_numbers<[1], [0], [0], [1], [0, 0, 1, 1], [], []>} : vector<8x32xf32>, vector<32x128xf32>, vector<8x128xf32> -> vector<8x128xf32>
    %145 = vector.broadcast %8 : vector<1x128xf32> to vector<8x128xf32>
    %146 = arith.addf %144, %145 : vector<8x128xf32>
    %cst_53 = arith.constant 5.000000e-01 : f32
    %147 = vector.broadcast %cst_53 : f32 to vector<8x128xf32>
    %148 = arith.mulf %147, %146 : vector<8x128xf32>
    %cst_54 = arith.constant 0.707106769 : f32
    %149 = vector.broadcast %cst_54 : f32 to vector<8x128xf32>
    %150 = arith.mulf %146, %149 : vector<8x128xf32>
    %151 = math.absf %150 : vector<8x128xf32>
    %cst_55 = arith.constant 0.327591091 : f32
    %152 = vector.broadcast %cst_55 : f32 to vector<8x128xf32>
    %153 = arith.mulf %152, %151 : vector<8x128xf32>
    %cst_56 = arith.constant 1.000000e+00 : f32
    %154 = vector.broadcast %cst_56 : f32 to vector<8x128xf32>
    %155 = arith.addf %154, %153 : vector<8x128xf32>
    %cst_57 = arith.constant 1.000000e+00 : f32
    %156 = vector.broadcast %cst_57 : f32 to vector<8x128xf32>
    %157 = arith.divf %156, %155 : vector<8x128xf32>
    %cst_58 = arith.constant 1.06140542 : f32
    %158 = vector.broadcast %cst_58 : f32 to vector<8x128xf32>
    %159 = arith.mulf %158, %157 : vector<8x128xf32>
    %cst_59 = arith.constant -1.45315206 : f32
    %160 = vector.broadcast %cst_59 : f32 to vector<8x128xf32>
    %161 = arith.addf %159, %160 : vector<8x128xf32>
    %162 = arith.mulf %161, %157 : vector<8x128xf32>
    %cst_60 = arith.constant 1.42141378 : f32
    %163 = vector.broadcast %cst_60 : f32 to vector<8x128xf32>
    %164 = arith.addf %162, %163 : vector<8x128xf32>
    %165 = arith.mulf %164, %157 : vector<8x128xf32>
    %cst_61 = arith.constant -0.284496725 : f32
    %166 = vector.broadcast %cst_61 : f32 to vector<8x128xf32>
    %167 = arith.addf %165, %166 : vector<8x128xf32>
    %168 = arith.mulf %167, %157 : vector<8x128xf32>
    %cst_62 = arith.constant 0.254829586 : f32
    %169 = vector.broadcast %cst_62 : f32 to vector<8x128xf32>
    %170 = arith.addf %168, %169 : vector<8x128xf32>
    %171 = arith.mulf %170, %157 : vector<8x128xf32>
    %cst_63 = arith.constant 0.000000e+00 : f32
    %172 = vector.broadcast %cst_63 : f32 to vector<8x128xf32>
    %173 = arith.subf %172, %151 : vector<8x128xf32>
    %174 = arith.mulf %173, %151 : vector<8x128xf32>
    %175 = math.exp %174 : vector<8x128xf32>
    %176 = arith.mulf %171, %175 : vector<8x128xf32>
    %cst_64 = arith.constant 1.000000e+00 : f32
    %177 = vector.broadcast %cst_64 : f32 to vector<8x128xf32>
    %178 = arith.subf %177, %176 : vector<8x128xf32>
    %cst_65 = arith.constant 0.000000e+00 : f32
    %179 = vector.broadcast %cst_65 : f32 to vector<8x128xf32>
    %180 = arith.cmpf oge, %150, %179 : vector<8x128xf32>
    %cst_66 = arith.constant 0.000000e+00 : f32
    %181 = vector.broadcast %cst_66 : f32 to vector<8x128xf32>
    %182 = arith.subf %181, %178 : vector<8x128xf32>
    %183 = arith.select %180, %178, %182 : vector<8x128xi1>, vector<8x128xf32>
    %cst_67 = arith.constant 1.000000e+00 : f32
    %184 = vector.broadcast %cst_67 : f32 to vector<8x128xf32>
    %185 = arith.addf %184, %183 : vector<8x128xf32>
    %186 = arith.mulf %148, %185 : vector<8x128xf32>
    %c0_68 = arith.constant 0 : index
    %c0_69 = arith.constant 0 : index
    %187 = vector.load %arg5[%c0_68, %c0_69] : memref<128x32xf32, #tpu.memory_space<vmem>>, vector<128x32xf32>
    %cst_70 = arith.constant dense<0.000000e+00> : vector<8x32xf32>
    %188 = tpu.matmul %186, %187, %cst_70 {dimension_numbers = #tpu.dot_dimension_numbers<[1], [0], [0], [1], [0, 0, 1, 1], [], []>} : vector<8x128xf32>, vector<128x32xf32>, vector<8x32xf32> -> vector<8x32xf32>
    %189 = arith.addf %120, %188 : vector<8x32xf32>
    %190 = vector.broadcast %9 : vector<1x32xf32> to vector<8x32xf32>
    %191 = arith.addf %189, %190 : vector<8x32xf32>
    %c0_71 = arith.constant 0 : index
    %c0_72 = arith.constant 0 : index
    %c0_73 = arith.constant 0 : index
    %192 = vector.load %arg7[%c0_71, %c0_72, %c0_73] : memref<1x8x32xf32, #tpu.memory_space<vmem>>, vector<1x8x32xf32>
    %193 = vector.shape_cast %192 : vector<1x8x32xf32> to vector<8x32xf32>
    %194 = vector.shape_cast %191 : vector<8x32xf32> to vector<1x8x32xf32>
    tpu.vector_store %arg7[%c0_71, %c0_72, %c0_73], %194 {strides = array<i32>} : memref<1x8x32xf32, #tpu.memory_space<vmem>>, vector<1x8x32xf32>,
    return
  }
  func.func @transform_0(%arg0: i32) -> (i32, i32, i32) {
    %c0_i32 = arith.constant 0 : i32
    %c0_i32_0 = arith.constant 0 : i32
    %c0_i32_1 = arith.constant 0 : i32
    return %arg0, %c0_i32, %c0_i32_0 : i32, i32, i32
  }
  func.func @transform_1(%arg0: i32) -> (i32, i32) {
    %c0_i32 = arith.constant 0 : i32
    %c0_i32_0 = arith.constant 0 : i32
    %c0_i32_1 = arith.constant 0 : i32
    return %c0_i32, %c0_i32_0 : i32, i32
  }
  func.func @transform_2(%arg0: i32) -> (i32, i32) {
    %c0_i32 = arith.constant 0 : i32
    %c0_i32_0 = arith.constant 0 : i32
    %c0_i32_1 = arith.constant 0 : i32
    return %c0_i32, %c0_i32_0 : i32, i32
  }
  func.func @transform_3(%arg0: i32) -> (i32, i32) {
    %c0_i32 = arith.constant 0 : i32
    %c0_i32_0 = arith.constant 0 : i32
    %c0_i32_1 = arith.constant 0 : i32
    return %c0_i32, %c0_i32_0 : i32, i32
  }
  func.func @transform_4(%arg0: i32) -> (i32, i32) {
    %c0_i32 = arith.constant 0 : i32
    %c0_i32_0 = arith.constant 0 : i32
    %c0_i32_1 = arith.constant 0 : i32
    return %c0_i32, %c0_i32_0 : i32, i32
  }
  func.func @transform_5(%arg0: i32) -> (i32, i32) {
    %c0_i32 = arith.constant 0 : i32
    %c0_i32_0 = arith.constant 0 : i32
    %c0_i32_1 = arith.constant 0 : i32
    return %c0_i32, %c0_i32_0 : i32, i32
  }
  func.func @transform_6(%arg0: i32) -> (i32, i32, i32) {
    %c0_i32 = arith.constant 0 : i32
    %c0_i32_0 = arith.constant 0 : i32
    %c0_i32_1 = arith.constant 0 : i32
    return %arg0, %c0_i32, %c0_i32_0 : i32, i32, i32
  }
}

</mosaic_0001>

<bundles_post_ra>
// kernel: gpt2_block.1
= control target key start
LH: loop header
LB: loop body
LE: loop exit
PB: predicated region body
PF: predicated region fallthrough
CT: control target
= control target key end

     0   :  { %11 = vsyncpa [#allocation3], 0  ;;  %s1400_s0 = inlined_call_operand.vmem [shape: f32[2,8,32], index: 0, kind: input, shape index: {}]   ;;  %s1401_s1 = inlined_call_operand.vmem [shape: f32[32,96], index: 1, kind: input, shape index: {}]   ;;  %s1402_s2 = inlined_call_operand.vmem [shape: f32[32,32], index: 2, kind: input, shape index: {}]   ;;  %s1403_s3 = inlined_call_operand.vmem [shape: f32[32,128], index: 3, kind: input, shape index: {}]   ;;  %s1404_s4 = inlined_call_operand.vmem [shape: f32[128,32], index: 4, kind: input, shape index: {}]   ;;  %s1405_s5 = inlined_call_operand.vmem [shape: f32[8,128], index: 5, kind: input, shape index: {}]   ;;  %s1406_s6 = inlined_call_operand.hbm [shape: f32[2,8,32], index: 6, kind: output, shape index: {}]  }
   0x1   :  { %13 = vsyncpa [#allocation3 + $0x1], 0  ;;  %s1126_s21 = smov 0   ;;  %s1128_s22 = smov 0  }
   0x2   :  { %s1130_s23 = smov 0   ;;  %s1132_s24 = smov 0  }
   0x3 LB: > { %s1147_s25 = sadd.s32 4294967295, %s1074_s24   ;;  %s899_s26 = sadd.s32 4294967294, %s1074_s24   ;;  %s1074_s24 = sphi %s1132_s24, %s1414_s24   ;;  %s1070_s23 = sphi %s1130_s23, %s1413_s23   ;;  %s1066_s22 = sphi %s1128_s22, %s1412_s22   ;;  %s1062_s21 = sphi %s1126_s21, %s1411_s21  }
   0x4   : > { %s1151_s27 = sadd.s32 1, %s1074_s24   ;;  %s157_s28 = sadd.s32 1, %s1070_s23 }
   0x5   : > { %s154_s29 = ssub.s32 %s1074_s24, %s1151_s27  ;;  %p167_p0 = scmp.ne.s32.totalorder %s1070_s23, %s1066_s22 }
   0x6   : > { %p155_p1 = scmp.eq.s32.totalorder %s154_s29, 0  ;;  %p168_p2 = scmp.eq.s32.totalorder %s1147_s25, 1 }
   0x7   : > { %p173_p3 = scmp.ne.s32.totalorder %s1066_s22, %s1062_s21  ;;  %p174_p4 = scmp.eq.s32.totalorder %s899_s26, 1 }
   0x8   : > { %s1162_s30 = scalar_select %p155_p1, %s1070_s23, %s157_s28  }
   0x9   : > { %p1164_p5 = por %p168_p2, %p167_p0  ;;  %p1168_p6 = por %p174_p4, %p173_p3 }
   0xa   : > { %p902_p7 = scmp.ge.s32.totalorder %s1074_s24, 1  ;;  %p214_p8 = scmp.lt.s32.totalorder %s1074_s24, 3 }
   0xc   : > { %p215_p9 = pnand %p902_p7, %p214_p8 }
   0xd   : > { %p243_p10 = scmp.lt.s32.totalorder (!%p215_p9), %s1147_s25, 1  ;;  %s1078_s14 = smov (!%p215_p9), 120  }
   0xe   : > { %218 = sbr.rel (%p215_p9) target bundleno = 1929 (0x789), region = 44  ;;  %s1079_s15 = smov (!%p215_p9), 96  }
   0xf   : > { %s1080_s16 = smov (!%p215_p9), 80   ;;  %s1081_s17 = smov (!%p215_p9), 88  }
  0x10   : > { %s1082_s18 = smov (!%p215_p9), 104   ;;  %s1083_s19 = smov (!%p215_p9), 72  }
  0x11   : > { %s1084_s20 = smov (!%p215_p9), 64   ;;  %s1085_s26 = smov (!%p215_p9), 56  }
  0x12   : > { %s1086_s28 = smov (!%p215_p9), 40   ;;  %s1087_s29 = smov (!%p215_p9), 48  }
  0x13   : > { %s244_s9 = scalar_select %p243_p10, %s1147_s25, 1  ;;  %vm256_vm0 = vcmask 261120   ;;  %v1076_v2 = vmov 32.0   ;;  %v293_v14 = vld [vmem:[%s1401_s1 + $0x18] sm:$0xff]  ;;  %v292_v15 = vld [vmem:[%s1401_s1 + $0x10] sm:$0xff]  ;;  %v291_v16 = vld [vmem:[%s1401_s1 + $0x8] sm:$0xff]  ;;  %v318_v43 = vlaneseq }
  0x14   : > { %986 = vrcp.f32 %v1076_v2  ;;  %310 = vmatpush.msra.mxu2 %v293_v14  ;;  %v290_v17 = vld [vmem:[%s1401_s1] sm:$0xff]  ;;  %vm326_vm5 = vcmask 64512   ;;  %s1090_s11 = smov 16  }
  0x15   : > { %s904_s10 = sshll.u32 %s244_s9, 3  ;;  %v978_v27 = vld [vmem:[%s1405_s5] ss:$0 sm:$0xff]  ;;  %v979_v30 = vld [vmem:[%s1405_s5 + $0x1] ss:$0 sm:$0xff]  ;;  %v319_v44 = vshrl.u32 %v318_v43, 7 }
  0x16   : > { %s246_s13 = scalar_lea.vmem %s1400_s0, %s904_s10  ;;  %311 = vmatpush.msra.mxu2 %v292_v15  ;;  %v980_v33 = vld [vmem:[%s1405_s5 + $0x4] ss:$0 sm:$0xff]  ;;  %v321_v45 = vand.u32 127, %v318_v43  ;;  %s1088_s9 = smov 8  }
  0x17   : > { %v1179_v0 = vld [vmem:[%s246_s13] sm:$0xff]  ;;  %s1077_s13 = smov 112   ;;  %s1089_s10 = smov 24  }
  0x18   : > { %v257_v1 = vsel %vm256_vm0, %v1179_v0, 0.0  ;;  %312 = vmatpush.msra.mxu2 %v291_v16  ;;  %vm322_vm6 = vcmp.ge.s32.totalorder %v319_v44, %v321_v45 }
  0x19   : > { %258 = vadd.xlane.f32.xlu0 %v257_v1 }
  0x1a   : > { %v987_v3 = vpop.eup %986  ;;  %313 = vmatpush.msra.mxu2 %v290_v17 }
  0x1b   : > { %v261_v4 = vmul.f32 32.0, %v987_v3  ;;  %vm265_vm1 = vweird.f32 %v987_v3 }
  0x1d   : > { %v262_v5 = vsub.f32 1.0, %v261_v4 }
  0x1f   : > { %v263_v6 = vmul.f32 %v987_v3, %v262_v5 }
  0x21   : > { %v264_v7 = vadd.f32 %v987_v3, %v263_v6 }
  0x23   : > { %v1183_v8 = vsel %vm265_vm1, %v987_v3, %v264_v7 }
  0x8c   : > { %v259_v9 = vpop.xlane.xlu0 %258 }
  0x8d   : > { %v267_v10 = vmul.f32 %v1183_v8, %v259_v9 }
  0x8f   : > { %v268_v11 = vsub.f32 %v1179_v0, %v267_v10 }
  0x91   : > { %v269_v12 = vmul.f32 %v268_v11, %v268_v11 }
  0x93   : > { %v270_v13 = vsel %vm256_vm0, %v269_v12, 0.0 }
  0x94   : > { %271 = vadd.xlane.f32.xlu0 %v270_v13 }
 0x107   : > { %v272_v18 = vpop.xlane.xlu0 %271 }
 0x108   : > { %v273_v19 = vmul.f32 %v272_v18, %v1183_v8 }
 0x10a   : > { %v274_v20 = vadd.f32 1e-05, %v273_v19 }
 0x10c   : > { %988 = vrsqrt.f32 %v274_v20  ;;  %vm281_vm3 = vweird.f32 %v274_v20 }
 0x112   : > { %v989_v21 = vpop.eup %988 }
 0x113   : > { %v276_v22 = vmul.f32 %v989_v21, %v274_v20  ;;  %vm282_vm2 = vweird.f32 %v989_v21 }
 0x114   : > { %vm283_vm4 = vmor %vm281_vm3, %vm282_vm2 }
 0x115   : > { %v277_v23 = vmul.f32 %v989_v21, %v276_v22 }
 0x117   : > { %v278_v24 = vmul.f32 0.5, %v277_v23 }
 0x119   : > { %v279_v25 = vsub.f32 1.5, %v278_v24 }
 0x11b   : > { %v280_v26 = vmul.f32 %v989_v21, %v279_v25 }
 0x11d   : > { %v284_v28 = vsel %vm283_vm4, %v989_v21, %v280_v26 }
 0x11e   : > { %v285_v29 = vmul.f32 %v284_v28, %v268_v11 }
 0x120   : > { %v287_v31 = vmul.f32 %v978_v27, %v285_v29 }
 0x122   : > { %v289_v32 = vadd.f32 %v979_v30, %v287_v31 }
 0x124   : > { %905 = vmatmul.msk.f32.vlgmr.msra.gmra.mxu2 %vm256_vm0, %v289_v32 }
 0x1a7   : > { %v315_v34 = vpop.f32.mrf.mxu2 }
 0x1a8   : > { %v1211_v35 = vadd.f32 %v980_v33, %v315_v34 }
 0x1aa   : > { %483 = vrot.lane.b32.xlu0 %v1211_v35, %s1077_s13  ;;  %403 = vrot.lane.b32.xlu2 %v1211_v35, %s1078_s14 }
 0x1ab   : > { %324 = vrot.lane.b32.xlu1 %v1211_v35, %s1079_s15 }
 0x1b2   : > { %485 = vrot.lane.b32.xlu2 %v1211_v35, %s1080_s16 }
 0x1b3   : > { %405 = vrot.lane.b32.xlu1 %v1211_v35, %s1081_s17 }
 0x1ba   : > { %563 = vrot.lane.b32.xlu2 %v1211_v35, %s1082_s18 }
 0x1bb   : > { %565 = vrot.lane.b32.xlu1 %v1211_v35, %s1083_s19 }
 0x204   : > { %v404_v36 = vpop.permute.xlu2 %403 }
 0x20c   : > { %v486_v38 = vpop.permute.xlu2 %485 }
 0x214   : > { %v564_v42 = vpop.permute.xlu2 %563 }
 0x21c   : > { %v484_v40 = vpop.permute.xlu0 %483 }
 0x21d   : > { %v325_v37 = vpop.permute.xlu1 %324 }
 0x21e   : > { %906 = vmatpush.xpose.msk.msra.mxu1 %vm326_vm5, %v325_v37 }
 0x221   : > { %907 = vmatmul.msk.f32.vlgmr.msra.gmra.mxu1 %vm326_vm5, %v1211_v35 }
 0x222   : > { %912 = vmatpush.xpose.msk.msrb.mxu1 %vm326_vm5, %v486_v38 }
 0x225   : > { %v406_v39 = vpop.permute.xlu1 %405 }
 0x226   : > { %909 = vmatpush.xpose.msk.msra.mxu3 %vm326_vm5, %v406_v39 }
 0x229   : > { %910 = vmatmul.msk.f32.vlgmr.msra.gmra.mxu3 %vm326_vm5, %v404_v36  ;;  %913 = vmatmul.msk.f32.vlgmr.msrb.gmra.mxu1 %vm326_vm5, %v484_v40 }
 0x22d   : > { %v566_v41 = vpop.permute.xlu1 %565 }
 0x22e   : > { %915 = vmatpush.xpose.msk.msra.mxu1 %vm326_vm5, %v566_v41 }
 0x231   : > { %916 = vmatmul.msk.f32.vlgmr.msra.gmra.mxu1 %vm326_vm5, %v564_v42 }
 0x29e   : > { %v348_v46 = vpop.f32.mrf.mxu1 }
 0x29f   : > { %v351_v47 = vmul.f32 0.35355338, %v348_v46 }
 0x2a1   : > { %v352_v48 = vsel %vm322_vm6, %v351_v47, -3.4028235e+38 }
 0x2a2   : > { %v353_v49 = vsel %vm326_vm5, %v352_v48, -inf }
 0x2a3   : > { %354 = vmax.xlane.f32.xlu1 %v353_v49 }
 0x2a6   : > { %v508_v50 = vpop.f32.mrf.mxu1 }
 0x2a7   : > { %v511_v51 = vmul.f32 0.35355338, %v508_v50 }
 0x2a9   : > { %v512_v52 = vsel %vm322_vm6, %v511_v51, -3.4028235e+38 }
 0x2aa   : > { %v513_v53 = vsel %vm326_vm5, %v512_v52, -inf }
 0x2ab   : > { %514 = vmax.xlane.f32.xlu0 %v513_v53 }
 0x2ac   : > { %v428_v54 = vpop.f32.mrf.mxu3 }
 0x2ad   : > { %v431_v55 = vmul.f32 0.35355338, %v428_v54 }
 0x2ae   : > { %v588_v56 = vpop.f32.mrf.mxu1 }
 0x2af   : > { %v432_v57 = vsel %vm322_vm6, %v431_v55, -3.4028235e+38  ;;  %v591_v59 = vmul.f32 0.35355338, %v588_v56 }
 0x2b0   : > { %v433_v58 = vsel %vm326_vm5, %v432_v57, -inf }
 0x2b1   : > { %434 = vmax.xlane.f32.xlu2 %v433_v58  ;;  %v592_v60 = vsel %vm322_vm6, %v591_v59, -3.4028235e+38 }
 0x2b2   : > { %v593_v61 = vsel %vm326_vm5, %v592_v60, -inf }
 0x2b9   : > { %594 = vmax.xlane.f32.xlu2 %v593_v61 }
 0x2d1   : > { %377 = vrot.lane.b32.xlu2 %v1211_v35, %s1084_s20 }
 0x316   : > { %v355_v62 = vpop.xlane.xlu1 %354 }
 0x317   : > { %v356_v63 = vsub.f32 %v352_v48, %v355_v62 }
 0x319   : > { %v357_v1 = vmul.f32 1.442695, %v356_v63 }
 0x31b   : > { %990 = vpow2.f32 %v357_v1 }
 0x31e   : > { %v515_v2 = vpop.xlane.xlu0 %514 }
 0x31f   : > { %v516_v3 = vsub.f32 %v512_v52, %v515_v2 }
 0x321   : > { %v991_v4 = vpop.eup %990  ;;  %v517_v5 = vmul.f32 1.442695, %v516_v3 }
 0x322   : > { %v359_v6 = vsel %vm326_vm5, %v991_v4, 0.0 }
 0x323   : > { %992 = vpow2.f32 %v517_v5  ;;  %360 = vadd.xlane.f32.xlu1 %v359_v6 }
 0x324   : > { %v435_v7 = vpop.xlane.xlu2 %434 }
 0x325   : > { %v436_v9 = vsub.f32 %v432_v57, %v435_v7 }
 0x327   : > { %v437_v10 = vmul.f32 1.442695, %v436_v9 }
 0x329   : > { %v1239_v11 = vpop.eup %992  ;;  %994 = vpow2.f32 %v437_v10 }
 0x32a   : > { %v519_v12 = vsel %vm326_vm5, %v1239_v11, 0.0 }
 0x32b   : > { %520 = vadd.xlane.f32.xlu1 %v519_v12 }
 0x32c   : > { %v595_v13 = vpop.xlane.xlu2 %594 }
 0x32d   : > { %v596_v14 = vsub.f32 %v592_v60, %v595_v13 }
 0x32f   : > { %v1243_v15 = vpop.eup %994  ;;  %v597_v16 = vmul.f32 1.442695, %v596_v14 }
 0x330   : > { %v439_v17 = vsel %vm326_vm5, %v1243_v15, 0.0 }
 0x331   : > { %996 = vpow2.f32 %v597_v16  ;;  %440 = vadd.xlane.f32.xlu2 %v439_v17  ;;  %v663_v16 = vld [vmem:[%s1402_s2 + $0x18] sm:$0xff]  ;;  %v661_v17 = vld [vmem:[%s1402_s2 + $0x8] sm:$0xff] }
 0x332   : > { %679 = vmatpush.msrb.mxu1 %v663_v16 }
 0x334   : > { %v378_v18 = vpop.permute.xlu2 %377 }
 0x335   : > { %398 = vmatpush.msrb.mxu2 %v378_v18  ;;  %v660_v18 = vld [vmem:[%s1402_s2] sm:$0xff] }
 0x337   : > { %v1247_v19 = vpop.eup %996 }
 0x338   : > { %v599_v20 = vsel %vm326_vm5, %v1247_v19, 0.0 }
 0x339   : > { %600 = vadd.xlane.f32.xlu0 %v599_v20 }
 0x344   : > { %457 = vrot.lane.b32.xlu1 %v1211_v35, %s1085_s26 }
 0x349   : > { %617 = vrot.lane.b32.xlu2 %v1211_v35, %s1086_s28 }
 0x34d   : > { %537 = vrot.lane.b32.xlu0 %v1211_v35, %s1087_s29  ;;  %s240_s29 = sand.u32 1, %s1066_s22  }
 0x396   : > { %v361_v21 = vpop.xlane.xlu1 %360 }
 0x397   : > { %998 = vrcp.f32 %v361_v21  ;;  %v373_v26 = vand.u32 2147483648, %v361_v21  ;;  %v371_v28 = vand.u32 2147483647, %v361_v21  ;;  %vm367_vm8 = vweird.f32 %v361_v21 }
 0x399   : > { %v374_v31 = vor.u32 1.1754944e-38, %v373_v26  ;;  %vm372_vm10 = vcmp.eq.f32.partialorder %v371_v28, 8.507059e+37 }
 0x39d   : > { %v999_v22 = vpop.eup %998 }
 0x39e   : > { %v363_v23 = vmul.f32 %v999_v22, %v361_v21  ;;  %v521_v24 = vpop.xlane.xlu1 %520  ;;  %vm368_vm7 = vweird.f32 %v999_v22 }
 0x39f   : > { %1000 = vrcp.f32 %v521_v24  ;;  %vm369_vm9 = vmor %vm367_vm8, %vm368_vm7  ;;  %v533_v53 = vand.u32 2147483648, %v521_v24  ;;  %vm527_vm1 = vweird.f32 %v521_v24  ;;  %v531_v57 = vand.u32 2147483647, %v521_v24 }
 0x3a0   : > { %v364_v25 = vsub.f32 1.0, %v363_v23 }
 0x3a1   : > { %v534_v1 = vor.u32 1.1754944e-38, %v533_v53  ;;  %vm532_vm6 = vcmp.eq.f32.partialorder %v531_v57, 8.507059e+37  ;;  %v798_v53 = vld [vmem:[%s1404_s4 + $0x70] sm:$0xff]  ;;  %v984_v57 = vld [vmem:[%s1405_s5 + $0x6] ss:$0 sm:$0xff] }
 0x3a2   : > { %v365_v27 = vmul.f32 %v999_v22, %v364_v25  ;;  %v981_v25 = vld [vmem:[%s1405_s5 + $0x5] ss:$0 sm:$0xff] }
 0x3a4   : > { %v366_v29 = vadd.f32 %v999_v22, %v365_v27  ;;  %v441_v30 = vpop.xlane.xlu2 %440 }
 0x3a5   : > { %1002 = vrcp.f32 %v441_v30  ;;  %v1001_v32 = vpop.eup %1000  ;;  %v453_v42 = vand.u32 2147483648, %v441_v30  ;;  %v451_v44 = vand.u32 2147483647, %v441_v30  ;;  %vm447_vm12 = vweird.f32 %v441_v30 }
 0x3a6   : > { %v370_v33 = vsel %vm369_vm9, %v999_v22, %v366_v29  ;;  %v523_v36 = vmul.f32 %v1001_v32, %v521_v24  ;;  %vm528_vm15 = vweird.f32 %v1001_v32  ;;  %vm656_vm9 = vcmask 130048  }
 0x3a7   : > { %v375_v34 = vsel %vm372_vm10, %v374_v31, %v370_v33  ;;  %v454_v48 = vor.u32 1.1754944e-38, %v453_v42  ;;  %vm452_vm14 = vcmp.eq.f32.partialorder %v451_v44, 8.507059e+37  ;;  %vm1256_vm2 = vmor %vm527_vm1, %vm528_vm15  ;;  %vm658_vm10 = vcmask 195584  }
 0x3a8   : > { %v376_v35 = vmul.f32 %v991_v4, %v375_v34  ;;  %v524_v40 = vsub.f32 1.0, %v523_v36  ;;  %v717_v36 = vld [vmem:[%s1403_s3 + $0x8] sm:$0xff] }
 0x3aa   : > { %908 = vmatmul.msk.f32.vlgmr.msrb.gmra.mxu2 %vm326_vm5, %v376_v35  ;;  %v525_v45 = vmul.f32 %v1001_v32, %v524_v40  ;;  %v719_v35 = vld [vmem:[%s1403_s3 + $0x18] sm:$0xff] }
 0x3ab   : > { %v1003_v37 = vpop.eup %1002 }
 0x3ac   : > { %v443_v38 = vmul.f32 %v1003_v37, %v441_v30  ;;  %v601_v39 = vpop.xlane.xlu0 %600  ;;  %vm448_vm11 = vweird.f32 %v1003_v37  ;;  %v526_v51 = vadd.f32 %v1001_v32, %v525_v45  ;;  %v618_v62 = vpop.permute.xlu2 %617 }
 0x3ad   : > { %1004 = vrcp.f32 %v601_v39  ;;  %vm449_vm13 = vmor %vm447_vm12, %vm448_vm11  ;;  %v613_v58 = vand.u32 2147483648, %v601_v39  ;;  %v611_v61 = vand.u32 2147483647, %v601_v39  ;;  %vm607_vm4 = vweird.f32 %v601_v39 }
 0x3ae   : > { %v444_v41 = vsub.f32 1.0, %v443_v38  ;;  %v530_v63 = vsel %vm1256_vm2, %v1001_v32, %v526_v51 }
 0x3af   : > { %v614_v3 = vor.u32 1.1754944e-38, %v613_v58  ;;  %vm612_vm8 = vcmp.eq.f32.partialorder %v611_v61, 8.507059e+37  ;;  %v535_v5 = vsel %vm532_vm6, %v534_v1, %v530_v63  ;;  %v794_v58 = vld [vmem:[%s1404_s4 + $0x50] sm:$0xff]  ;;  %v791_v1 = vld [vmem:[%s1404_s4 + $0x38] sm:$0xff] }
 0x3b0   : > { %v445_v43 = vmul.f32 %v1003_v37, %v444_v41  ;;  %v536_v10 = vmul.f32 %v1239_v11, %v535_v5  ;;  %v662_v11 = vld [vmem:[%s1402_s2 + $0x10] sm:$0xff]  ;;  %v789_v5 = vld [vmem:[%s1404_s4 + $0x28] sm:$0xff] }
 0x3b1   : > { %680 = vmatpush.msrb.mxu1 %v662_v11 }
 0x3b2   : > { %v446_v46 = vadd.f32 %v1003_v37, %v445_v43 }
 0x3b3   : > { %v1005_v47 = vpop.eup %1004  ;;  %681 = vmatpush.msrb.mxu1 %v661_v17 }
 0x3b4   : > { %v450_v49 = vsel %vm449_vm13, %v1003_v37, %v446_v46  ;;  %v603_v50 = vmul.f32 %v1005_v47, %v601_v39  ;;  %vm608_vm3 = vweird.f32 %v1005_v47  ;;  %v716_v37 = vld [vmem:[%s1403_s3] sm:$0xff] }
 0x3b5   : > { %v455_v52 = vsel %vm452_vm14, %v454_v48, %v450_v49  ;;  %vm609_vm7 = vmor %vm607_vm4, %vm608_vm3  ;;  %682 = vmatpush.msrb.mxu1 %v660_v18 }
 0x3b6   : > { %v604_v54 = vsub.f32 1.0, %v603_v50  ;;  %v458_v55 = vpop.permute.xlu1 %457  ;;  %v456_v56 = vmul.f32 %v1243_v15, %v455_v52  ;;  %v799_v52 = vld [vmem:[%s1404_s4 + $0x78] sm:$0xff] }
 0x3b7   : > { %478 = vmatpush.msra.mxu2 %v458_v55  ;;  %800 = vmatpush.msra.mxu0 %v799_v52  ;;  %v796_v55 = vld [vmem:[%s1404_s4 + $0x60] sm:$0xff] }
 0x3b8   : > { %v605_v60 = vmul.f32 %v1005_v47, %v604_v54  ;;  %911 = vmatmul.msk.f32.vlgmr.msra.gmra.mxu2 %vm326_vm5, %v456_v56  ;;  %v797_v54 = vld [vmem:[%s1404_s4 + $0x68] sm:$0xff]  ;;  %v795_v56 = vld [vmem:[%s1404_s4 + $0x58] sm:$0xff] }
 0x3b9   : > { %638 = vmatpush.msrb.mxu2 %v618_v62  ;;  %801 = vmatpush.msra.mxu0 %v798_v53  ;;  %v792_v62 = vld [vmem:[%s1404_s4 + $0x40] sm:$0xff] }
 0x3ba   : > { %v606_v2 = vadd.f32 %v1005_v47, %v605_v60  ;;  %v793_v60 = vld [vmem:[%s1404_s4 + $0x48] sm:$0xff] }
 0x3bb   : > { %802 = vmatpush.msra.mxu0 %v797_v54 }
 0x3bc   : > { %v610_v4 = vsel %vm609_vm7, %v1005_v47, %v606_v2  ;;  %v982_v47 = vld [vmem:[%s1405_s5 + $0x2] ss:$0 sm:$0xff] }
 0x3bd   : > { %v615_v6 = vsel %vm612_vm8, %v614_v3, %v610_v4  ;;  %803 = vmatpush.msra.mxu0 %v796_v55  ;;  %v790_v3 = vld [vmem:[%s1404_s4 + $0x30] sm:$0xff] }
 0x3be   : > { %v616_v7 = vmul.f32 %v1247_v19, %v615_v6 }
 0x3bf   : > { %v538_v9 = vpop.permute.xlu0 %537  ;;  %804 = vmatpush.msra.mxu0 %v795_v56 }
 0x3c0   : > { %558 = vmatpush.msrb.mxu3 %v538_v9  ;;  %917 = vmatmul.msk.f32.vlgmr.msrb.gmra.mxu2 %vm326_vm5, %v616_v7  ;;  %v788_v7 = vld [vmem:[%s1404_s4 + $0x20] sm:$0xff]  ;;  %v787_v9 = vld [vmem:[%s1404_s4 + $0x18] sm:$0xff] }
 0x3c1   : > { %914 = vmatmul.msk.f32.vlgmr.msrb.gmra.mxu3 %vm326_vm5, %v536_v10  ;;  %805 = vmatpush.msra.mxu0 %v794_v58  ;;  %v786_v10 = vld [vmem:[%s1404_s4 + $0x10] sm:$0xff] }
 0x3c2   : > { %736 = vmatpush.msra.mxu3 %v719_v35 }
 0x3c3   : > { %806 = vmatpush.msra.mxu0 %v793_v60 }
 0x3c5   : > { %807 = vmatpush.msra.mxu0 %v792_v62 }
 0x3c7   : > { %808 = vmatpush.msra.mxu0 %v791_v1 }
 0x3c9   : > { %809 = vmatpush.msra.mxu0 %v790_v3 }
 0x3cb   : > { %810 = vmatpush.msra.mxu0 %v789_v5 }
 0x3cd   : > { %811 = vmatpush.msra.mxu0 %v788_v7 }
 0x3cf   : > { %812 = vmatpush.msra.mxu0 %v787_v9 }
 0x3d1   : > { %813 = vmatpush.msra.mxu0 %v786_v10 }
 0x42d   : > { %v400_v12 = vpop.f32.mrf.mxu2 }
 0x43b   : > { %v480_v13 = vpop.f32.mrf.mxu2 }
 0x43c   : > { %644 = vrot.lane.b32.xlu0 %v480_v13, %s1088_s9  ;;  %s903_s9 = sshll.u32 %s240_s29, 3 }
 0x43d   : > { %s242_s16 = scalar_lea.vmem [#allocation2], %s903_s9  ;;  %s1032_s9 = scalar_lea.hbm %s1406_s6, 16 }
 0x43e   : > { %s837_s17 = sshll.u32 %s242_s16, 4  ;;  %s838_s17 = int_to_ptr.vmem [resolvable:$true] %s837_s17 }
 0x443   : > { %v640_v14 = vpop.f32.mrf.mxu2 }
 0x444   : > { %v560_v15 = vpop.f32.mrf.mxu3  ;;  %652 = vrot.lane.b32.xlu2 %v640_v14, %s1089_s10  ;;  %s921_s10 = sshll.u32 %s1147_s25, 3  ;;  %s825_s25 = scalar_lea.sflag [#allocation3], %s240_s29 }
 0x445   : > { %648 = vrot.lane.b32.xlu1 %v560_v15, %s1090_s11  ;;  %v784_v15 = vld [vmem:[%s1404_s4] sm:$0xff]  ;;  %s835_s13 = scalar_lea.hbm %s1406_s6, %s921_s10 }
 0x446   : > { %s839_s18 = sshll.u32 %s835_s13, 4  ;;  %s840_s18 = int_to_ptr.hbm [resolvable:$true] %s839_s18 }
 0x447   : > { %s1026_s19 = sshra.s32 %s840_s18, 4  ;;  %s1027_s19 = int_to_ptr.hbm [resolvable:$true] %s1026_s19 }
 0x448   : > { %s1028_s20 = scalar_lea.hbm %s1027_s19, 8  ;;  %p1033_p0 = scmp.lt.s32.totalorder %s1027_s19, %s1406_s6 }
 0x449   : > { %p1029_p11 = scmp.ne.s32.totalorder %s1027_s19, %s1028_s20  ;;  %p1034_p1 = scmp.lt.s32.totalorder %s1032_s9, %s1028_s20 }
 0x44b   : > { %p1030_p12 = pnand %p1029_p11, %p1164_p5  ;;  %p1035_p2 = por %p1034_p1, %p1033_p0 }
 0x44d   : > { %p1031_p13 = pneg %p1030_p12 }
 0x44f   : > { %p1036_p3 = pnand %p1035_p2, %p1031_p13 }
 0x49e   : > { %v653_v22 = vpop.permute.xlu2 %652 }
 0x4ae   : > { %v645_v19 = vpop.permute.xlu0 %644 }
 0x4af   : > { %v655_v20 = vsel %vm326_vm5, %v400_v12, %v645_v19  ;;  %v785_v12 = vld [vmem:[%s1404_s4 + $0x8] sm:$0xff] }
 0x4b0   : > { %814 = vmatpush.msra.mxu0 %v785_v12 }
 0x4b2   : > { %815 = vmatpush.msra.mxu0 %v784_v15 }
 0x4b7   : > { %v649_v21 = vpop.permute.xlu1 %648 }
 0x4b8   : > { %v657_v23 = vsel %vm656_vm9, %v655_v20, %v649_v21 }
 0x4b9   : > { %v659_v24 = vsel %vm658_vm10, %v657_v23, %v653_v22 }
 0x4ba   : > { %918 = vmatmul.msk.f32.vlgmr.msrb.gmra.mxu1 %vm256_vm0, %v659_v24 }
 0x537   : > { %v684_v26 = vpop.f32.mrf.mxu1 }
 0x538   : > { %v687_v27 = vadd.f32 %v684_v26, %v1179_v0  ;;  %v718_v0 = vld [vmem:[%s1403_s3 + $0x10] sm:$0xff] }
 0x539   : > { %737 = vmatpush.msra.mxu3 %v718_v0 }
 0x53a   : > { %v1285_v28 = vadd.f32 %v981_v25, %v687_v27 }
 0x53b   : > { %738 = vmatpush.msra.mxu3 %v717_v36 }
 0x53c   : > { %v690_v29 = vsel %vm256_vm0, %v1285_v28, 0.0 }
 0x53d   : > { %691 = vadd.xlane.f32.xlu0 %v690_v29  ;;  %739 = vmatpush.msra.mxu3 %v716_v37 }
 0x5b0   : > { %v692_v30 = vpop.xlane.xlu0 %691 }
 0x5b1   : > { %v693_v31 = vmul.f32 %v692_v30, %v1183_v8 }
 0x5b3   : > { %v694_v32 = vsub.f32 %v1285_v28, %v693_v31 }
 0x5b5   : > { %v695_v33 = vmul.f32 %v694_v32, %v694_v32 }
 0x5b7   : > { %v696_v34 = vsel %vm256_vm0, %v695_v33, 0.0 }
 0x5b8   : > { %697 = vadd.xlane.f32.xlu1 %v696_v34 }
 0x62b   : > { %v698_v38 = vpop.xlane.xlu1 %697 }
 0x62c   : > { %v699_v39 = vmul.f32 %v698_v38, %v1183_v8  ;;  %v983_v8 = vld [vmem:[%s1405_s5 + $0x3] ss:$0 sm:$0xff] }
 0x62e   : > { %v700_v40 = vadd.f32 1e-05, %v699_v39 }
 0x630   : > { %1006 = vrsqrt.f32 %v700_v40  ;;  %vm707_vm11 = vweird.f32 %v700_v40 }
 0x636   : > { %v1007_v41 = vpop.eup %1006 }
 0x637   : > { %v702_v42 = vmul.f32 %v1007_v41, %v700_v40  ;;  %vm708_vm5 = vweird.f32 %v1007_v41 }
 0x638   : > { %vm709_vm12 = vmor %vm707_vm11, %vm708_vm5 }
 0x639   : > { %v703_v43 = vmul.f32 %v1007_v41, %v702_v42 }
 0x63b   : > { %v704_v44 = vmul.f32 0.5, %v703_v43  ;;  %v985_v43 = vld [vmem:[%s1405_s5 + $0x7] ss:$0 sm:$0xff] }
 0x63d   : > { %v705_v45 = vsub.f32 1.5, %v704_v44 }
 0x63f   : > { %v706_v46 = vmul.f32 %v1007_v41, %v705_v45 }
 0x641   : > { %v710_v48 = vsel %vm709_vm12, %v1007_v41, %v706_v46 }
 0x642   : > { %v711_v49 = vmul.f32 %v710_v48, %v694_v32 }
 0x644   : > { %v713_v50 = vmul.f32 %v982_v47, %v711_v49 }
 0x646   : > { %v715_v51 = vadd.f32 %v983_v8, %v713_v50 }
 0x648   : > { %919 = vmatmul.msk.f32.vlgmr.msra.gmra.mxu3 %vm256_vm0, %v715_v51 }
 0x6cb   : > { %v741_v59 = vpop.f32.mrf.mxu3 }
 0x6cc   : > { %v742_v61 = vadd.f32 %v984_v57, %v741_v59 }
 0x6ce   : > { %v745_v63 = vmul.f32 0.70710677, %v742_v61  ;;  %v744_v40 = vmul.f32 0.5, %v742_v61 }
 0x6d0   : > { %v746_v2 = vand.u32 2147483647, %v745_v63  ;;  %vm779_vm2 = vcmp.ge.f32.partialorder %v745_v63, 0.0 }
 0x6d2   : > { %v747_v4 = vmul.f32 0.3275911, %v746_v2  ;;  %v773_v22 = vsub.f32 0.0, %v746_v2 }
 0x6d4   : > { %v748_v6 = vadd.f32 1.0, %v747_v4  ;;  %v774_v26 = vmul.f32 %v773_v22, %v746_v2 }
 0x6d6   : > { %1008 = vrcp.f32 %v748_v6  ;;  %v760_v11 = vand.u32 2147483648, %v748_v6  ;;  %v758_v18 = vand.u32 2147483647, %v748_v6  ;;  %vm754_vm14 = vweird.f32 %v748_v6 }
 0x6d7   : > { %v775_v30 = vmul.f32 1.442695, %v774_v26 }
 0x6d8   : > { %v761_v20 = vor.u32 1.1754944e-38, %v760_v11  ;;  %vm759_vm1 = vcmp.eq.f32.partialorder %v758_v18, 8.507059e+37 }
 0x6d9   : > { %1010 = vpow2.f32 %v775_v30 }
 0x6dc   : > { %v1009_v13 = vpop.eup %1008 }
 0x6dd   : > { %v750_v14 = vmul.f32 %v1009_v13, %v748_v6  ;;  %vm755_vm13 = vweird.f32 %v1009_v13 }
 0x6de   : > { %vm756_vm15 = vmor %vm754_vm14, %vm755_vm13 }
 0x6df   : > { %v751_v16 = vsub.f32 1.0, %v750_v14  ;;  %v1011_v0 = vpop.eup %1010 }
 0x6e1   : > { %v752_v17 = vmul.f32 %v1009_v13, %v751_v16 }
 0x6e3   : > { %v753_v19 = vadd.f32 %v1009_v13, %v752_v17 }
 0x6e5   : > { %v757_v21 = vsel %vm756_vm15, %v1009_v13, %v753_v19 }
 0x6e6   : > { %v762_v23 = vsel %vm759_vm1, %v761_v20, %v757_v21 }
 0x6e7   : > { %v764_v24 = vmul.f32 1.0614054, %v762_v23 }
 0x6e9   : > { %v765_v25 = vadd.f32 -1.4531521, %v764_v24 }
 0x6eb   : > { %v766_v27 = vmul.f32 %v765_v25, %v762_v23 }
 0x6ed   : > { %v767_v29 = vadd.f32 1.4214138, %v766_v27 }
 0x6ef   : > { %v768_v31 = vmul.f32 %v767_v29, %v762_v23 }
 0x6f1   : > { %v769_v32 = vadd.f32 -0.28449672, %v768_v31 }
 0x6f3   : > { %v770_v33 = vmul.f32 %v769_v32, %v762_v23 }
 0x6f5   : > { %v771_v34 = vadd.f32 0.2548296, %v770_v33 }
 0x6f7   : > { %v772_v35 = vmul.f32 %v771_v34, %v762_v23 }
 0x6f9   : > { %v777_v36 = vmul.f32 %v1011_v0, %v772_v35 }
 0x6fb   : > { %v778_v37 = vsub.f32 1.0, %v777_v36 }
 0x6fd   : > { %v780_v38 = vsub.f32 0.0, %v778_v37 }
 0x6ff   : > { %v781_v39 = vsel %vm779_vm2, %v778_v37, %v780_v38 }
 0x700   : > { %v782_v41 = vadd.f32 1.0, %v781_v39 }
 0x702   : > { %v783_v42 = vmul.f32 %v782_v41, %v744_v40 }
 0x704   : > { %816 = vmatmul.f32.vlgmr.msra.gmra.mxu0 %v783_v42 }
 0x781   : > { %v817_v44 = vpop.f32.mrf.mxu0 }
 0x782   : > { %v820_v45 = vadd.f32 %v817_v44, %v1285_v28 }
 0x784   : > { %v822_v46 = vadd.f32 %v985_v43, %v820_v45 }
 0x786   : > { %823 = vst.msk [vmem:[%s242_s16] sm:$0xff] %vm256_vm0, %v822_v46 }
 0x787   : > { %1039 = shalt.err (!%p1036_p3)
}
 0x788   : > { %924 = dma.vmem_to_hbm [thread:$0]  (%p1164_p5), %s838_s17, 128, %s840_s18, %s825_s25  }
 0x789 PF: > { %p930_p4 = scmp.ge.s32.totalorder %s1074_s24, 2  ;;  %s851_s29 = sand.u32 1, %s1062_s21  }
 0x78a   : > { %s852_s12 = scalar_lea.sflag [#allocation3], %s851_s29 }
 0x78b   : > { %p927_p7 = pnand %p930_p4, %p1168_p6 }
 0x78d   : > { %p928_p8 = pneg %p927_p7 }
 0x78f   : > { %1057 = dma.done.wait (%p928_p8), %s852_s12, 128  }
 0x790   : > { %1059 = vsyncadd (%p928_p8), %s852_s12, 4294967168  ;;  %p16_p9 = scmp.ge.s32.totalorder %s1151_s27, 4   ;;  %s1411_s21 = smov %s1066_s22 }
 0x791   : > { %s1412_s22 = smov %s1070_s23  ;;  %s1413_s23 = smov %s1162_s30 }
 0x792   : > { %s1414_s24 = smov %s1151_s27  ;;  %18 = sbr.rel (!%p16_p9) target bundleno = 3 (0x3), region = 79 }
 0x797   :  { %858 = vsyncpa [#allocation3], 1 }
 0x798   :  { %860 = vsyncpa [#allocation3 + $0x1], 1 }

</bundles_post_ra>
